<compile_context>
chip_gen: v7x
topology: tpu7x:2x2x1
jax: 0.10.0
libtpu: 0.0.40
codegen_flags: <defaults>
</compile_context>

<pallas_src>
import jax
import jax.numpy as jnp
from jax.experimental import pallas as pl
from jax.experimental.pallas import tpu as pltpu


def _round_up(x, m):
    return (x + m - 1) // m * m


def _laplace_kernel(x_ref, w1_ref, b1_ref, w2_ref, b2_ref, seg_ref, o_ref,
                    feat_acc):
    """Fused Laplace predictive forward; one (batch-tile, K-tile) grid step.

    x_ref   : [TB, TK]  f32  input tile (cast to bf16 in-kernel)
    w1_ref  : [TK, F]   bf16 feature-extractor weight K-slice
    b1_ref  : [1, F]    f32
    w2_ref  : [F, NP]   bf16 folded + lane-padded posterior-sampled last layers
    b2_ref  : [1, NP]   f32  folded biases; pad columns hold -1e30
    seg_ref : [NP, NP]  f32  block-diagonal segment-sum matrix
    o_ref   : [TB, NP]  f32  per-sample predictive probabilities (pad cols = 0)
    feat_acc: [TB, F]   f32  scratch accumulator across K tiles
    """
    k = pl.program_id(1)

    @pl.when(k == 0)
    def _():
        feat_acc[...] = jnp.zeros_like(feat_acc)

    # Feature extractor matmul: bf16 MXU inputs, f32 accumulation across K.
    feat_acc[...] += jnp.dot(x_ref[...].astype(jnp.bfloat16), w1_ref[...],
                             preferred_element_type=jnp.float32)

    @pl.when(k == pl.num_programs(1) - 1)
    def _():
        feat = jnp.maximum(feat_acc[...] + b1_ref[...], 0.0)

        # All S sampled last layers in one lane-dense MXU call (N = NP >= 128).
        logits = jnp.dot(feat.astype(jnp.bfloat16), w2_ref[...],
                         preferred_element_type=jnp.float32) + b2_ref[...]

        # Full-width segmented softmax (see module docstring). Softmax is
        # shift-invariant, so subtracting the per-row global max instead of
        # per-segment maxima is exact; samples share the same features so no
        # cross-segment exp underflow occurs in practice.
        m = jnp.max(logits, axis=-1, keepdims=True)
        e = jnp.exp(logits - m)                               # one EUP pass
        denom = jnp.dot(e, seg_ref[...],
                        preferred_element_type=jnp.float32)   # segment sums
        probs = e / jnp.maximum(denom, 1e-30)                 # exact divide
        o_ref[...] = probs.astype(o_ref.dtype)                # one full store


def laplace_predictive_samples(x_flat, w1_bf, b1, w2_samples, b2_samples):
    """x_flat [B, D] f32, w1_bf [D, F] bf16, b1 [F] f32, w2_samples [S, F, C],
    b2_samples [S, C] -> predictive class probabilities [S, B, C] (f32)."""
    S, F, C = w2_samples.shape
    B, D = x_flat.shape
    N = S * C
    NP = _round_up(N, 128)            # lane-dense folded output width

    # --- fold + lane-pad the sampled last layers along the matmul N dim -----
    w2_all = jnp.transpose(w2_samples, (1, 0, 2)).reshape(F, N)
    w2_all = jnp.pad(w2_all, ((0, 0), (0, NP - N))).astype(jnp.bfloat16)
    # Pad bias = -1e30 so pad columns never win the row max and exp() -> 0.
    b2_all = jnp.pad(b2_samples.reshape(1, N).astype(jnp.float32),
                     ((0, 0), (0, NP - N)), constant_values=-1e30)

    # Block-diagonal segment-sum matrix: denom[:, j] = sum of exp over the
    # C-wide sample segment owning column j (pad columns sum to 0).
    idx = jnp.arange(NP)
    same_seg = (idx[:, None] // C) == (idx[None, :] // C)
    real = idx < N
    seg_mat = (same_seg & real[:, None] & real[None, :]).astype(jnp.float32)

    # --- batch / K tiling: fixed, padded tiles (no unbounded tb=B fallback) --
    if B >= 1024:
        tb = 256                       # cap at 256 (v7x-safe; bigger ok v5e/v6e)
    elif B >= 128:
        tb = 128
    else:
        tb = _round_up(B, 8)
    BP = _round_up(B, tb)

    DP = _round_up(D, 128)
    if DP % 512 == 0:
        tk = min(512, DP)
    elif DP % 256 == 0:
        tk = min(256, DP)
    else:
        tk = 128
    nb, nk = BP // tb, DP // tk

    x_p = x_flat.astype(jnp.float32)
    if BP != B or DP != D:
        x_p = jnp.pad(x_p, ((0, BP - B), (0, DP - D)))
    w1_p = w1_bf if DP == D else jnp.pad(w1_bf, ((0, DP - D), (0, 0)))
    b1_2d = b1.reshape(1, F).astype(jnp.float32)

    # --- VMEM budget from actual tile footprints (capped v7x-safe) ----------
    vmem_bytes = (2 * tb * tk * 4            # x tile, double-buffered, f32
                  + 2 * tk * F * 2           # W1 K-slice, double-buffered, bf16
                  + F * 4                    # b1 (single-buffered)
                  + F * NP * 2               # folded W2 (single-buffered)
                  + NP * 4                   # folded b2 (single-buffered)
                  + NP * NP * 4              # segment matrix (single-buffered)
                  + 2 * tb * NP * 4          # output tile, double-buffered
                  + tb * F * 4)              # feat accumulator scratch
    vmem_limit = int(min(max(2 * vmem_bytes + (4 << 20), 16 << 20), 56 << 20))

    const = dict(pipeline_mode=pl.Buffered(1))   # grid-invariant blocks

    cost = pl.CostEstimate(
        flops=2 * BP * DP * F + 2 * BP * F * NP + 2 * BP * NP * NP,
        transcendentals=BP * NP,
        bytes_accessed=(x_p.size * 4 + w1_p.size * 2 + F * 4 + F * NP * 2
                        + NP * 4 + NP * NP * 4 + BP * NP * 4),
    )

    probs_flat = pl.pallas_call(
        _laplace_kernel,
        out_shape=jax.ShapeDtypeStruct((BP, NP), jnp.float32),
        grid=(nb, nk),
        in_specs=[
            pl.BlockSpec((tb, tk), lambda i, k: (i, k)),           # x
            pl.BlockSpec((tk, F), lambda i, k: (k, 0)),            # W1 slice
            pl.BlockSpec((1, F), lambda i, k: (0, 0), **const),    # b1
            pl.BlockSpec((F, NP), lambda i, k: (0, 0), **const),   # folded W2
            pl.BlockSpec((1, NP), lambda i, k: (0, 0), **const),   # folded b2
            pl.BlockSpec((NP, NP), lambda i, k: (0, 0), **const),  # seg matrix
        ],
        out_specs=pl.BlockSpec((tb, NP), lambda i, k: (i, 0)),
        scratch_shapes=[pltpu.VMEM((tb, F), jnp.float32)],
        compiler_params=pltpu.CompilerParams(
            dimension_semantics=("parallel", "arbitrary"),
            vmem_limit_bytes=vmem_limit),
        cost_estimate=cost,
    )(x_p, w1_p, b1_2d, w2_all, b2_all, seg_mat)

    # Strip batch / lane padding, unfold samples: [BP, NP] -> [S, B, C].
    return jnp.transpose(probs_flat[:B, :N].reshape(B, S, C), (1, 0, 2))


class LaplaceApproxPallas:
    """Synthetic stand-in for LaplaceApprox(map, weights='last_layer', hessian='diag').

    map: flatten -> Linear(D, F) -> ReLU -> Linear(F, C); last layer is Linear(F, C).
    The diagonal GGN/Hessian that laplace.fit() would estimate is synthesized
    deterministically here.
    """

    def __init__(self, key, in_shape, feat_dim, num_classes,
                 prior_precision=1.0, temperature=1.0):
        c_in, h, w = in_shape
        d = c_in * h * w
        k1, k2, k3, k4 = jax.random.split(key, 4)
        self.w1 = jax.random.normal(k1, (d, feat_dim), jnp.float32) / jnp.sqrt(d)
        self.w1_bf = self.w1.astype(jnp.bfloat16)   # cached MXU-ready weight
        self.b1 = jnp.zeros((feat_dim,), jnp.float32)
        self.w2_mean = (jax.random.normal(k2, (feat_dim, num_classes), jnp.float32)
                        / jnp.sqrt(feat_dim))
        self.b2_mean = jnp.zeros((num_classes,), jnp.float32)

        # TODO(synk): laplace.fit()/optimize_prior_precision (training-time Hessian
        # estimation) has no forward-pass Pallas equivalent; diag(H) is synthesized.
        n_params = feat_dim * num_classes + num_classes
        h_diag = jnp.abs(jax.random.normal(k3, (n_params,), jnp.float32)) + 0.1
        h_factor = 1.0 / temperature
        self.post_scale = 1.0 / jnp.sqrt(h_factor * h_diag + prior_precision)

        self.feat_dim = feat_dim
        self.num_classes = num_classes
        self._sample_key = k4

    def sample_last_layer(self, n_samples):
        """Posterior samples of the last-layer parameters (glue, plain JAX).

        Ordering matches torch vector_to_parameters for nn.Linear:
        weight [C, F] (row-major) then bias [C].
        NOTE: the sample key is reused across calls for deterministic testing.
        """
        f, c = self.feat_dim, self.num_classes
        eps = jax.random.normal(self._sample_key,
                                (n_samples, f * c + c), jnp.float32)
        theta = eps * self.post_scale[None, :]
        d_w = theta[:, :f * c].reshape(n_samples, c, f)
        d_b = theta[:, f * c:]
        w2_s = self.w2_mean[None, :, :] + jnp.transpose(d_w, (0, 2, 1))  # [S, F, C]
        b2_s = self.b2_mean[None, :] + d_b                               # [S, C]
        return w2_s, b2_s

    def forward(self, x_nchw, n_samples=1):
        b = x_nchw.shape[0]
        x_flat = x_nchw.reshape(b, -1).astype(jnp.float32)
        w2_s, b2_s = self.sample_last_layer(n_samples)
        out = laplace_predictive_samples(x_flat, self.w1_bf, self.b1, w2_s, b2_s)
        # out_activation is None by default -> no-op.
        if n_samples == 1:
            out = out[0]
        return out


def _reference(x_flat, w1, b1, w2_s, b2_s):
    """Pure-JAX reference mirroring the kernel's bf16 inputs / f32 accumulation."""
    h = jnp.dot(x_flat.astype(jnp.bfloat16), w1.astype(jnp.bfloat16),
                preferred_element_type=jnp.float32) + b1.reshape(1, -1)
    h = jnp.maximum(h, 0.0)
    logits = jnp.einsum('bf,sfc->sbc', h.astype(jnp.bfloat16),
                        w2_s.astype(jnp.bfloat16),
                        preferred_element_type=jnp.float32) + b2_s[:, None, :]
    return jax.nn.softmax(logits, axis=-1)


if __name__ == "__main__":
    key = jax.random.PRNGKey(0)
    k_model, k_x = jax.random.split(key)

    B, C_IN, H, W = 2, 4, 16, 16
    FEAT, NUM_CLASSES = 128, 16
    x = jax.random.normal(k_x, (B, C_IN, H, W), jnp.float32)

    model = LaplaceApproxPallas(k_model, (C_IN, H, W), FEAT, NUM_CLASSES,
                                prior_precision=1.0, temperature=1.0)

    # Multi-sample predictive: [S, B, C]
    out_multi = jax.block_until_ready(model.forward(x, n_samples=4))
    assert out_multi.shape == (4, B, NUM_CLASSES), out_multi.shape

    # n_samples == 1 -> squeezed to [B, C]
    out_single = jax.block_until_ready(model.forward(x, n_samples=1))
    assert out_single.shape == (B, NUM_CLASSES), out_single.shape

    # Correctness check against a pure-JAX reference (same bf16/f32 mix).
    w2_s, b2_s = model.sample_last_layer(4)
    ref = _reference(x.reshape(B, -1), model.w1, model.b1, w2_s, b2_s)
    assert jnp.allclose(out_multi, ref, atol=2e-3), \
        float(jnp.max(jnp.abs(out_multi - ref)))
    # Exact divide in the kernel softmax -> rows sum to 1 to f32 roundoff.
    assert jnp.allclose(jnp.sum(out_multi, axis=-1), 1.0, atol=2e-3)
    assert jnp.allclose(jnp.sum(out_single, axis=-1), 1.0, atol=2e-3)

    print("KERNEL_OK")
</pallas_src>

<mosaic_0001>
module attributes {stable_mosaic.version = 11 : i64} {
  func.func @_laplace_kernel(%arg0: i32, %arg1: i32, %arg2: memref<8x512xf32, #tpu.memory_space<vmem>>, %arg3: memref<512x128xbf16, #tpu.memory_space<vmem>>, %arg4: memref<1x128xf32, #tpu.memory_space<vmem>>, %arg5: memref<128x128xbf16, #tpu.memory_space<vmem>>, %arg6: memref<1x128xf32, #tpu.memory_space<vmem>>, %arg7: memref<128x128xf32, #tpu.memory_space<vmem>>, %arg8: memref<8x128xf32, #tpu.memory_space<vmem>>, %arg9: memref<8x128xf32, #tpu.memory_space<vmem>>) attributes {dimension_semantics = [#tpu.dimension_semantics<parallel>, #tpu.dimension_semantics<arbitrary>], iteration_bounds = array<i64: 1, 2>, scalar_prefetch = 0 : i64, scratch_operands = 1 : i64, tpu.core_type = #tpu.core_type<tc>, window_params = [{transform_indices = @transform_0, window_bounds = array<i64: 8, 512>}, {transform_indices = @transform_1, window_bounds = array<i64: 512, 128>}, {pipeline_mode = #tpu.pipeline_mode<synchronous>, transform_indices = @transform_2, window_bounds = array<i64: 1, 128>}, {pipeline_mode = #tpu.pipeline_mode<synchronous>, transform_indices = @transform_3, window_bounds = array<i64: 128, 128>}, {pipeline_mode = #tpu.pipeline_mode<synchronous>, transform_indices = @transform_4, window_bounds = array<i64: 1, 128>}, {pipeline_mode = #tpu.pipeline_mode<synchronous>, transform_indices = @transform_5, window_bounds = array<i64: 128, 128>}, {transform_indices = @transform_6, window_bounds = array<i64: 8, 128>}]} {
    %c0_i32 = arith.constant 0 : i32
    %0 = arith.cmpi eq, %arg1, %c0_i32 : i32
    %1 = arith.extui %0 : i1 to i32
    %c0_i32_0 = arith.constant 0 : i32
    %2 = arith.cmpi ne, %1, %c0_i32_0 : i32
    scf.if %2 {
      %cst_9 = arith.constant 0.000000e+00 : f32
      %13 = vector.broadcast %cst_9 : f32 to vector<8x128xf32>
      %c0_10 = arith.constant 0 : index
      %c0_11 = arith.constant 0 : index
      %14 = vector.load %arg9[%c0_10, %c0_11] : memref<8x128xf32, #tpu.memory_space<vmem>>, vector<8x128xf32>
      tpu.vector_store %arg9[%c0_10, %c0_11], %13 {strides = array<i32>} : memref<8x128xf32, #tpu.memory_space<vmem>>, vector<8x128xf32>,
    } else {
    }
    %c0 = arith.constant 0 : index
    %c0_1 = arith.constant 0 : index
    %3 = vector.load %arg9[%c0, %c0_1] : memref<8x128xf32, #tpu.memory_space<vmem>>, vector<8x128xf32>
    %c0_2 = arith.constant 0 : index
    %c0_3 = arith.constant 0 : index
    %4 = vector.load %arg2[%c0_2, %c0_3] : memref<8x512xf32, #tpu.memory_space<vmem>>, vector<8x512xf32>
    %5 = arith.truncf %4 : vector<8x512xf32> to vector<8x512xbf16>
    %c0_4 = arith.constant 0 : index
    %c0_5 = arith.constant 0 : index
    %6 = vector.load %arg3[%c0_4, %c0_5] : memref<512x128xbf16, #tpu.memory_space<vmem>>, vector<512x128xbf16>
    %cst = arith.constant dense<0.000000e+00> : vector<8x128xf32>
    %7 = tpu.matmul %5, %6, %cst {dimension_numbers = #tpu.dot_dimension_numbers<[1], [0], [0], [1], [0, 0, 1, 1], [], []>} : vector<8x512xbf16>, vector<512x128xbf16>, vector<8x128xf32> -> vector<8x128xf32>
    %8 = arith.addf %3, %7 : vector<8x128xf32>
    %c0_6 = arith.constant 0 : index
    %c0_7 = arith.constant 0 : index
    %9 = vector.load %arg9[%c0_6, %c0_7] : memref<8x128xf32, #tpu.memory_space<vmem>>, vector<8x128xf32>
    tpu.vector_store %arg9[%c0_6, %c0_7], %8 {strides = array<i32>} : memref<8x128xf32, #tpu.memory_space<vmem>>, vector<8x128xf32>,
    %c1_i32 = arith.constant 1 : i32
    %10 = arith.cmpi eq, %arg1, %c1_i32 : i32
    %11 = arith.extui %10 : i1 to i32
    %c0_i32_8 = arith.constant 0 : i32
    %12 = arith.cmpi ne, %11, %c0_i32_8 : i32
    scf.if %12 {
      %c0_9 = arith.constant 0 : index
      %c0_10 = arith.constant 0 : index
      %13 = vector.load %arg9[%c0_9, %c0_10] : memref<8x128xf32, #tpu.memory_space<vmem>>, vector<8x128xf32>
      %c0_11 = arith.constant 0 : index
      %c0_12 = arith.constant 0 : index
      %14 = vector.load %arg4[%c0_11, %c0_12] : memref<1x128xf32, #tpu.memory_space<vmem>>, vector<1x128xf32>
      %15 = vector.broadcast %14 : vector<1x128xf32> to vector<8x128xf32>
      %16 = arith.addf %13, %15 : vector<8x128xf32>
      %cst_13 = arith.constant 0.000000e+00 : f32
      %17 = vector.broadcast %cst_13 : f32 to vector<8x128xf32>
      %18 = arith.maximumf %16, %17 : vector<8x128xf32>
      %19 = arith.truncf %18 : vector<8x128xf32> to vector<8x128xbf16>
      %c0_14 = arith.constant 0 : index
      %c0_15 = arith.constant 0 : index
      %20 = vector.load %arg5[%c0_14, %c0_15] : memref<128x128xbf16, #tpu.memory_space<vmem>>, vector<128x128xbf16>
      %cst_16 = arith.constant dense<0.000000e+00> : vector<8x128xf32>
      %21 = tpu.matmul %19, %20, %cst_16 {dimension_numbers = #tpu.dot_dimension_numbers<[1], [0], [0], [1], [0, 0, 1, 1], [], []>} : vector<8x128xbf16>, vector<128x128xbf16>, vector<8x128xf32> -> vector<8x128xf32>
      %c0_17 = arith.constant 0 : index
      %c0_18 = arith.constant 0 : index
      %22 = vector.load %arg6[%c0_17, %c0_18] : memref<1x128xf32, #tpu.memory_space<vmem>>, vector<1x128xf32>
      %23 = vector.broadcast %22 : vector<1x128xf32> to vector<8x128xf32>
      %24 = arith.addf %21, %23 : vector<8x128xf32>
      %cst_19 = arith.constant dense<0xFF800000> : vector<8xf32>
      %25 = vector.multi_reduction <maximumf>, %24, %cst_19 [1] : vector<8x128xf32> to vector<8xf32>
      %26 = vector.shape_cast %25 : vector<8xf32> to vector<8x1xf32>
      %27 = vector.broadcast %26 : vector<8x1xf32> to vector<8x128xf32>
      %28 = arith.subf %24, %27 : vector<8x128xf32>
      %29 = math.exp %28 : vector<8x128xf32>
      %c0_20 = arith.constant 0 : index
      %c0_21 = arith.constant 0 : index
      %30 = vector.load %arg7[%c0_20, %c0_21] : memref<128x128xf32, #tpu.memory_space<vmem>>, vector<128x128xf32>
      %cst_22 = arith.constant dense<0.000000e+00> : vector<8x128xf32>
      %31 = tpu.matmul %29, %30, %cst_22 {dimension_numbers = #tpu.dot_dimension_numbers<[1], [0], [0], [1], [0, 0, 1, 1], [], []>} : vector<8x128xf32>, vector<128x128xf32>, vector<8x128xf32> -> vector<8x128xf32>
      %cst_23 = arith.constant 1.000000e-30 : f32
      %32 = vector.broadcast %cst_23 : f32 to vector<8x128xf32>
      %33 = arith.maximumf %31, %32 : vector<8x128xf32>
      %34 = arith.divf %29, %33 : vector<8x128xf32>
      %c0_24 = arith.constant 0 : index
      %c0_25 = arith.constant 0 : index
      %35 = vector.load %arg8[%c0_24, %c0_25] : memref<8x128xf32, #tpu.memory_space<vmem>>, vector<8x128xf32>
      tpu.vector_store %arg8[%c0_24, %c0_25], %34 {strides = array<i32>} : memref<8x128xf32, #tpu.memory_space<vmem>>, vector<8x128xf32>,
    } else {
    }
    return
  }
  func.func @transform_0(%arg0: i32, %arg1: i32) -> (i32, i32) {
    %c0_i32 = arith.constant 0 : i32
    return %arg0, %arg1 : i32, i32
  }
  func.func @transform_1(%arg0: i32, %arg1: i32) -> (i32, i32) {
    %c0_i32 = arith.constant 0 : i32
    %c0_i32_0 = arith.constant 0 : i32
    return %arg1, %c0_i32 : i32, i32
  }
  func.func @transform_2(%arg0: i32, %arg1: i32) -> (i32, i32) {
    %c0_i32 = arith.constant 0 : i32
    %c0_i32_0 = arith.constant 0 : i32
    %c0_i32_1 = arith.constant 0 : i32
    return %c0_i32, %c0_i32_0 : i32, i32
  }
  func.func @transform_3(%arg0: i32, %arg1: i32) -> (i32, i32) {
    %c0_i32 = arith.constant 0 : i32
    %c0_i32_0 = arith.constant 0 : i32
    %c0_i32_1 = arith.constant 0 : i32
    return %c0_i32, %c0_i32_0 : i32, i32
  }
  func.func @transform_4(%arg0: i32, %arg1: i32) -> (i32, i32) {
    %c0_i32 = arith.constant 0 : i32
    %c0_i32_0 = arith.constant 0 : i32
    %c0_i32_1 = arith.constant 0 : i32
    return %c0_i32, %c0_i32_0 : i32, i32
  }
  func.func @transform_5(%arg0: i32, %arg1: i32) -> (i32, i32) {
    %c0_i32 = arith.constant 0 : i32
    %c0_i32_0 = arith.constant 0 : i32
    %c0_i32_1 = arith.constant 0 : i32
    return %c0_i32, %c0_i32_0 : i32, i32
  }
  func.func @transform_6(%arg0: i32, %arg1: i32) -> (i32, i32) {
    %c0_i32 = arith.constant 0 : i32
    %c0_i32_0 = arith.constant 0 : i32
    return %arg0, %c0_i32 : i32, i32
  }
}

</mosaic_0001>

<bundles_post_ra>
// kernel: tpu_custom_call.1
= control target key start
LH: loop header
LB: loop body
LE: loop exit
PB: predicated region body
PF: predicated region fallthrough
CT: control target
= control target key end

     0   :  { %s1964_s0 = inlined_call_operand.hbm [shape: f32[8,1024], index: 0, kind: input, shape index: {}]   ;;  %s1965_s1 = inlined_call_operand.hbm [shape: bf16[1024,128], index: 1, kind: input, shape index: {}]   ;;  %s1966_s2 = inlined_call_operand.vmem [shape: f32[1,128], index: 2, kind: input, shape index: {}]   ;;  %s1967_s3 = inlined_call_operand.hbm [shape: bf16[128,128], index: 3, kind: input, shape index: {}]   ;;  %s1968_s4 = inlined_call_operand.vmem [shape: f32[1,128], index: 4, kind: input, shape index: {}]   ;;  %s1969_s5 = inlined_call_operand.hbm [shape: f32[128,128], index: 5, kind: input, shape index: {}]   ;;  %s1970_s6 = inlined_call_operand.hbm [shape: f32[8,128], index: 6, kind: output, shape index: {}]  }
   0x1   :  { %1976 = sst [smem:[#allocation17_spill]] %s1964_s0 }
   0x2   :  { %11 = vsyncpa [#allocation4], 0 }
   0x3   :  { %13 = vsyncpa [#allocation4 + $0x1], 0 }
   0x4   :  { %14 = vsyncpa [#allocation7], 0 }
   0x5   :  { %16 = vsyncpa [#allocation7 + $0x1], 0 }
   0x6   :  { %17 = vsyncpa [#allocation10], 0 }
   0x7   :  { %18 = vsyncpa [#allocation5], 0  ;;  %s1650_s21 = smov 0   ;;  %s1652_s22 = smov 0  }
   0x8   :  { %s1654_s23 = smov 0   ;;  %s1656_s24 = smov 0  }
   0x9   :  { %s1658_s25 = smov 0   ;;  %s1660_s26 = smov 0  }
   0xa LB: > { %s1679_s27 = sadd.s32 4294967295, %s1600_s26   ;;  %p58_p0 = scmp.ne.s32.totalorder %s1584_s22, %s1580_s21  ;;  %s1600_s26 = sphi %s1660_s26, %s24_s26   ;;  %s1596_s25 = sphi %s1658_s25, %s1994_s25   ;;  %s1592_s24 = sphi %s1656_s24, %s1993_s24   ;;  %s1588_s23 = sphi %s1654_s23, %s1992_s23   ;;  %s1584_s22 = sphi %s1652_s22, %s1991_s22   ;;  %s1580_s21 = sphi %s1650_s21, %s1990_s21  }
   0xb   : > { %p1971_p1 = scmp.eq.s32.totalorder %s1679_s27, 0  ;;  %p1038_p2 = scmp.ge.s32.totalorder %s1600_s26, 1 }
   0xc   : > { %p205_p3 = scmp.lt.s32.totalorder %s1600_s26, 3  ;;  %s1602_s30 = smov [#allocation8]  }
   0xd   : > { %p1687_p4 = por %p1971_p1, %p58_p0  ;;  %s220_s7 = sshll.u32 %s1602_s30, 4  ;;  %s221_s7 = int_to_ptr.vmem [resolvable:$true] %s220_s7 }
   0xe   : > { %p1691_p5 = pnand %p1038_p2, %p205_p3  ;;  %s1603_s9 = smov [#allocation9]  }
   0xf   : > { %s1977_s28 = scalar_select %p1687_p4, 1, 0 }
  0x10   : > { %s1978_s29 = scalar_select %p1691_p5, 1, 0 }
  0x11   : > { %p1268_p6 = pneg %p1691_p5  ;;  %s236_s10 = sshll.u32 %s1603_s9, 4  ;;  %s1703_s10 = int_to_ptr.vmem [resolvable:$true] %s236_s10 }
  0x12   : > { %s1392_s13 = scalar_lea.hbm %s1967_s3, 1024 }
  0x13   : > { %p1699_p7 = pnand %p1268_p6, %p1971_p1  ;;  %p1393_p8 = scmp.ne.s32.totalorder %s1967_s3, %s1392_s13 }
  0x14   : > { %p1399_p12 = scmp.lt.u32.totalorder %s1392_s13, %s1967_s3 }
  0x15   : > { %p1394_p9 = pneg %p1699_p7 }
  0x17   : > { %p1395_p10 = pnand %p1394_p9, %p1393_p8 }
  0x19   : > { %p1396_p11 = pneg %p1395_p10 }
  0x1b   : > { %p1401_p13 = pnand %p1399_p12, %p1396_p11 }
  0x1d   : > { %1404 = shalt.err (!%p1401_p13)
}
  0x1e   : > { %s1405_s18 = scalar_lea.vmem %s221_s7, 1024  ;;  %p1413_p6 = scmp.lt.s32.totalorder %s221_s7, %s221_s7 }
  0x1f   : > { %p1406_p0 = scmp.ne.s32.totalorder %s221_s7, %s1405_s18  ;;  %p1414_p1 = scmp.lt.s32.totalorder %s1405_s18, %s1405_s18 }
  0x21   : > { %p1408_p2 = pnand %p1406_p0, %p1394_p9  ;;  %p1415_p4 = por %p1414_p1, %p1413_p6 }
  0x23   : > { %p1409_p3 = pneg %p1408_p2 }
  0x25   : > { %p1416_p5 = pnand %p1415_p4, %p1409_p3 }
  0x27   : > { %1419 = shalt.err (!%p1416_p5)
}
  0x28   : > { %s1974_s19 = smov 64   ;;  %s1975_s20 = smov 4  }
  0x29   : > { %1271 = dma.hbm_to_vmem [thread:$0]  (!%p1699_p7), %s1967_s3, 1024, %s221_s7, [#allocation7], %s1974_s19, %s1974_s19, %s1975_s20  }
  0x2a   : > { %s1420_s12 = scalar_lea.hbm %s1969_s5, 2048 }
  0x2b   : > { %p1421_p1 = scmp.ne.s32.totalorder %s1969_s5, %s1420_s12  ;;  %p1427_p8 = scmp.lt.u32.totalorder %s1420_s12, %s1969_s5 }
  0x2d   : > { %p1423_p4 = pnand %p1421_p1, %p1394_p9 }
  0x2f   : > { %p1424_p5 = pneg %p1423_p4 }
  0x31   : > { %p1429_p10 = pnand %p1427_p8, %p1424_p5 }
  0x33   : > { %1432 = shalt.err (!%p1429_p10)
}
  0x34   : > { %s1433_s7 = scalar_lea.vmem %s1703_s10, 2048  ;;  %p1441_p0 = scmp.lt.s32.totalorder %s1703_s10, %s1703_s10 }
  0x35   : > { %p1434_p11 = scmp.ne.s32.totalorder %s1703_s10, %s1433_s7  ;;  %p1442_p2 = scmp.lt.s32.totalorder %s1433_s7, %s1433_s7 }
  0x37   : > { %p1436_p12 = pnand %p1434_p11, %p1394_p9  ;;  %p1443_p3 = por %p1442_p2, %p1441_p0 }
  0x39   : > { %p1437_p13 = pneg %p1436_p12 }
  0x3b   : > { %p1444_p6 = pnand %p1443_p3, %p1437_p13 }
  0x3d   : > { %1447 = shalt.err (!%p1444_p6)
}
  0x3e   : > { %s1606_s17 = smov 128   ;;  %s1607_s18 = smov 8  }
  0x3f   : > { %1274 = dma.hbm_to_vmem [thread:$0]  (!%p1699_p7), %s1969_s5, 2048, %s1703_s10, [#allocation10], %s1606_s17, %s1606_s17, %s1607_s18  }
  0x40   : > { %s33_s9 = sadd.s32 1, %s1596_s25  ;;  %s45_s11 = sadd.s32 1, %s1588_s23 }
  0x41   : > { %p34_p9 = scmp.ge.s32.totalorder %s33_s9, 2  ;;  %p52_p1 = scmp.ne.s32.totalorder %s1588_s23, %s1584_s22 }
  0x42   : > { %p53_p4 = scmp.eq.s32.totalorder %s1600_s26, 0  ;;  %p1284_p5 = scmp.lt.s32.totalorder %s1600_s26, 2 }
  0x43   : > { %s1996_s9 = smov (%p34_p9, %s33_s9), 0  ;;  %s1764_s12 = sand.u32 1, %s1588_s23  }
  0x44   : > { %p54_p8 = por %p53_p4, %p52_p1  ;;  %s41_s8 = ssub.s32 %s1596_s25, %s1996_s9 }
  0x45   : > { %p43_p10 = scmp.eq.s32.totalorder %s41_s8, 0  ;;  %s1042_s10 = sshll.u32 %s1764_s12, 5 }
  0x46   : > { %s1101_s13 = sshll.u32 %s1596_s25, 9  ;;  %s1980_s0 = sld [smem:[#allocation17_spill]] }
  0x47   : > { %s1771_s14 = scalar_select %p43_p10, %s1588_s23, %s45_s11  }
  0x48   : > { %s254_s17 = scalar_lea.vmem [#allocation3], %s1042_s10  ;;  %p1782_p7 = pnand %p1284_p5, %p54_p8 }
  0x49   : > { %s264_s18 = sshll.u32 %s254_s17, 4  ;;  %s1045_s30 = sshll.u32 %s1764_s12, 8  ;;  %s1778_s18 = int_to_ptr.vmem [resolvable:$true] %s264_s18 }
  0x4a   : > { %s1102_s11 = sshll.u32 %s1596_s25, 12  ;;  %s251_s8 = scalar_lea.sflag [#allocation4], %s1764_s12 }
  0x4b   : > { %p1450_p12 = pneg %p1782_p7 }
  0x4c   : > { %s1776_s7 = scalar_lea.hbm %s1980_s0, %s1101_s13  ;;  %s1453_s16 = scalar_lea.hbm %s1980_s0, 1024 }
  0x4d   : > { %s1448_s13 = scalar_lea.hbm %s1776_s7, 512  ;;  %p1454_p2 = scmp.lt.u32.totalorder %s1776_s7, %s1980_s0 }
  0x4e   : > { %p1449_p11 = scmp.ne.s32.totalorder %s1776_s7, %s1448_s13  ;;  %p1455_p3 = scmp.lt.u32.totalorder %s1453_s16, %s1448_s13 }
  0x4f   : > { %p1457_p9 = scmp.lt.u32.totalorder %s1448_s13, %s1776_s7 }
  0x50   : > { %p1451_p13 = pnand %p1450_p12, %p1449_p11  ;;  %p1456_p6 = por %p1455_p3, %p1454_p2 }
  0x52   : > { %p1452_p0 = pneg %p1451_p13  ;;  %p1458_p1 = por %p1457_p9, %p1456_p6 }
  0x54   : > { %p1459_p4 = pnand %p1458_p1, %p1452_p0 }
  0x56   : > { %1462 = shalt.err (!%p1459_p4)
}
  0x57   : > { %s1463_s20 = scalar_lea.vmem %s1778_s18, 512  ;;  %s1608_s10 = smov [#allocation3]  }
  0x58   : > { %p1464_p5 = scmp.ne.s32.totalorder %s1778_s18, %s1463_s20  ;;  %s1468_s15 = sshll.u32 %s1608_s10, 4  ;;  %s1469_s15 = int_to_ptr.vmem [resolvable:$false] %s1468_s15 }
  0x59   : > { %s1470_s19 = scalar_lea.vmem %s1469_s15, 1024  ;;  %p1471_p11 = scmp.lt.s32.totalorder %s1778_s18, %s1469_s15 }
  0x5a   : > { %p1466_p8 = pnand %p1464_p5, %p1450_p12  ;;  %p1472_p13 = scmp.lt.s32.totalorder %s1470_s19, %s1463_s20 }
  0x5c   : > { %p1467_p10 = pneg %p1466_p8  ;;  %p1473_p2 = por %p1472_p13, %p1471_p11 }
  0x5e   : > { %p1474_p3 = pnand %p1473_p2, %p1467_p10 }
  0x60   : > { %1477 = shalt.err (!%p1474_p3)
}
  0x61   : > { %1278 = dma.hbm_to_vmem [thread:$0]  (!%p1782_p7), %s1776_s7, 512, %s1778_s18, %s251_s8  }
  0x62   : > { %s275_s13 = scalar_lea.vmem [#allocation6], %s1045_s30  ;;  %s271_s17 = sand.u32 1, %s1600_s26  }
  0x63   : > { %s282_s16 = sshll.u32 %s275_s13, 4  ;;  %s1824_s15 = scalar_lea.hbm %s1965_s1, %s1102_s11  ;;  %s1817_s16 = int_to_ptr.vmem [resolvable:$true] %s282_s16 }
  0x64   : > { %s1826_s19 = scalar_lea.sflag [#allocation7], %s271_s17  ;;  %s1478_s0 = scalar_lea.hbm %s1824_s15, 4096 }
  0x65   : > { %p1479_p0 = scmp.ne.s32.totalorder %s1824_s15, %s1478_s0  ;;  %s1483_s18 = scalar_lea.hbm %s1965_s1, 8192 }
  0x66   : > { %p1484_p1 = scmp.lt.u32.totalorder %s1824_s15, %s1965_s1  ;;  %p1485_p4 = scmp.lt.u32.totalorder %s1483_s18, %s1478_s0 }
  0x67   : > { %p1481_p6 = pnand %p1479_p0, %p1450_p12  ;;  %p1487_p8 = scmp.lt.u32.totalorder %s1478_s0, %s1824_s15 }
  0x68   : > { %p1486_p5 = por %p1485_p4, %p1484_p1 }
  0x69   : > { %p1482_p9 = pneg %p1481_p6 }
  0x6a   : > { %p1488_p10 = por %p1487_p8, %p1486_p5 }
  0x6c   : > { %p1489_p11 = pnand %p1488_p10, %p1482_p9 }
  0x6e   : > { %1492 = shalt.err (!%p1489_p11)
}
  0x6f   : > { %s1493_s11 = scalar_lea.vmem %s1817_s16, 4096  ;;  %s1609_s13 = smov [#allocation6]  }
  0x70   : > { %p1494_p13 = scmp.ne.s32.totalorder %s1817_s16, %s1493_s11  ;;  %s1498_s17 = sshll.u32 %s1609_s13, 4  ;;  %s1499_s17 = int_to_ptr.vmem [resolvable:$false] %s1498_s17 }
  0x71   : > { %s1500_s20 = scalar_lea.vmem %s1499_s17, 8192  ;;  %p1501_p0 = scmp.lt.s32.totalorder %s1817_s16, %s1499_s17 }
  0x72   : > { %p1496_p2 = pnand %p1494_p13, %p1450_p12  ;;  %p1502_p6 = scmp.lt.s32.totalorder %s1500_s20, %s1493_s11 }
  0x74   : > { %p1497_p3 = pneg %p1496_p2  ;;  %p1503_p1 = por %p1502_p6, %p1501_p0 }
  0x76   : > { %p1504_p4 = pnand %p1503_p1, %p1497_p3 }
  0x78   : > { %1507 = shalt.err (!%p1504_p4)
}
  0x79   : > { %s1982_s0 = smov 4   ;;  %s1983_s10 = smov 64  }
  0x7a   : > { %1281 = dma.hbm_to_vmem [thread:$0]  (!%p1782_p7), %s1824_s15, 4096, %s1817_s16, %s1826_s19, %s1983_s10, %s1983_s10, %s1982_s0  }
  0x7b   : > { %p1984_p12 = scmp.ne.s32.totalorder %s1978_s29, 0 }
  0x7c   : > { %s296_s12 = sand.u32 (!%p1984_p12), 1, %s1584_s22   ;;  %p1985_p9 = scmp.ne.s32.totalorder (!%p1984_p12), %s1977_s28, 0 }
  0x7d   : > { %294 = sbr.rel (%p1984_p12) target bundleno = 1044 (0x414), region = 44  ;;  %s1049_s7 = sshll.u32 (!%p1984_p12), %s296_s12, 5 }
  0x7e   : > { %s297_s18 = scalar_lea.sflag (!%p1984_p12), [#allocation4], %s296_s12  ;;  %s1858_s30 = scalar_lea.vmem (!%p1984_p12), [#allocation3], %s1049_s7 }
  0x84   : > { %1559 = dma.done.wait (%p1985_p9), %s297_s18, 512  }
  0x85   : > { %1561 = vsyncadd (%p1985_p9), %s297_s18, 4294966784  ;;  %s305_s21 = sand.u32 1, %s1679_s27   ;;  %s1050_s8 = sshll.u32 %s296_s12, 8 }
  0x86   : > { %s306_s16 = scalar_lea.sflag [#allocation7], %s305_s21  ;;  %s1865_s15 = scalar_lea.vmem [#allocation6], %s1050_s8 }
  0x87   : > { %1563 = dma.done.wait (%p1985_p9), %s306_s16, 4096  }
  0x88   : > { %1565 = vsyncadd (%p1985_p9), %s306_s16, 4294963200  ;;  %p1986_p7 = scmp.eq.s32.totalorder %s1679_s27, 0 }
  0x8a   : > { %1567 = dma.done.wait (%p1986_p7), [#allocation7], 1024   ;;  %p1987_p5 = pmov %p1986_p7 }
  0x8c   : > { %1569 = vsyncadd (%p1987_p5), [#allocation7], 4294966272  ;;  %p1988_p8 = pmov %p1987_p5 }
  0x8d   : > { %p1989_p10 = pmov %p1987_p5 }
  0x8e   : > { %1571 = dma.done.wait (%p1988_p8), [#allocation10], 2048  }
  0x8f   : > { %1573 = vsyncadd (%p1989_p10), [#allocation10], 4294965248  ;;  %p1053_p11 = scmp.ne.s32.totalorder %s1592_s24, 0 }
  0x90   : > { %v1610_v0 = vmov (!%p1053_p11), 0.0  }
  0x91   : > { %352 = sbr.rel (%p1053_p11) target bundleno = 152 (0x98), region = 64  ;;  %353 = vst [vmem:[#allocation2] sm:$0xff] (!%p1053_p11), %v1610_v0 }
  0x98 PF: > { %v1348_v1 = vld [vmem:[%s1865_s15 + $0x40] sm:$0xff]   ;;  %v1352_v5 = vld [vmem:[%s1865_s15 + $0x48] sm:$0xff]   ;;  %v1356_v9 = vld [vmem:[%s1865_s15 + $0x50] sm:$0xff]   ;;  %p1086_p13 = scmp.ne.s32.totalorder %s1592_s24, 1 }
  0x99   : > { %v1349_v2 = vld [vmem:[%s1865_s15 + $0xc0] sm:$0xff]   ;;  %1103 = vmatprep.subr.bf16.mxu0 %v1348_v1  ;;  %v1353_v6 = vld [vmem:[%s1865_s15 + $0xc8] sm:$0xff]   ;;  %v1357_v10 = vld [vmem:[%s1865_s15 + $0xd0] sm:$0xff]   ;;  %v1611_v55 = vmov (!%p1086_p13), 0.0   ;;  %vm1612_vm0 = vmmov (!%p1086_p13), 0  }
  0x9a   : > { %v1350_v3 = vld [vmem:[%s1865_s15] sm:$0xff]   ;;  %1125 = vmatprep.subr.bf16.mxu1 %v1349_v2  ;;  %v1354_v7 = vld [vmem:[%s1865_s15 + $0x8] sm:$0xff]   ;;  %v1358_v11 = vld [vmem:[%s1865_s15 + $0x10] sm:$0xff]  }
  0x9b   : > { %v1351_v4 = vld [vmem:[%s1865_s15 + $0x80] sm:$0xff]   ;;  %1104 = vmatpush3.bf16.msra.mxu0 %v1350_v3  ;;  %v1355_v8 = vld [vmem:[%s1865_s15 + $0x88] sm:$0xff]   ;;  %v1359_v12 = vld [vmem:[%s1865_s15 + $0x90] sm:$0xff]  }
  0x9c   : > { %1126 = vmatpush3.bf16.msra.mxu1 %v1351_v4  ;;  %1105 = vmatprep.subr.bf16.mxu0 %v1352_v5  ;;  %v1360_v13 = vld [vmem:[%s1865_s15 + $0x58] sm:$0xff]   ;;  %v1364_v17 = vld [vmem:[%s1865_s15 + $0x60] sm:$0xff]   ;;  %v1368_v21 = vld [vmem:[%s1865_s15 + $0x68] sm:$0xff]  }
  0x9d   : > { %1127 = vmatprep.subr.bf16.mxu1 %v1353_v6  ;;  %v1361_v14 = vld [vmem:[%s1865_s15 + $0xd8] sm:$0xff]   ;;  %v1365_v18 = vld [vmem:[%s1865_s15 + $0xe0] sm:$0xff]   ;;  %v1369_v22 = vld [vmem:[%s1865_s15 + $0xe8] sm:$0xff]  }
  0x9e   : > { %v1362_v15 = vld [vmem:[%s1865_s15 + $0x18] sm:$0xff]   ;;  %v1366_v19 = vld [vmem:[%s1865_s15 + $0x20] sm:$0xff]   ;;  %v1370_v23 = vld [vmem:[%s1865_s15 + $0x28] sm:$0xff]  }
  0x9f   : > { %1106 = vmatpush3.bf16.msra.mxu0 %v1354_v7  ;;  %v1363_v16 = vld [vmem:[%s1865_s15 + $0x98] sm:$0xff]   ;;  %v1367_v20 = vld [vmem:[%s1865_s15 + $0xa0] sm:$0xff]   ;;  %v1371_v24 = vld [vmem:[%s1865_s15 + $0xa8] sm:$0xff]   ;;  %v1613_v7 = vmov (!%p1086_p13), 0.0|0.0  }
  0xa0   : > { %1128 = vmatpush3.bf16.msra.mxu1 %v1355_v8  ;;  %1107 = vmatprep.subr.bf16.mxu0 %v1356_v9  ;;  %v1372_v25 = vld [vmem:[%s1865_s15 + $0x70] sm:$0xff]   ;;  %v1376_v29 = vld [vmem:[%s1865_s15 + $0x78] sm:$0xff]   ;;  %v356_v33 = vld [vmem:[%s1858_s30 + $0x8] sm:$0xff] }
  0xa1   : > { %1129 = vmatprep.subr.bf16.mxu1 %v1357_v10  ;;  %v1373_v26 = vld [vmem:[%s1865_s15 + $0xf0] sm:$0xff]   ;;  %v1377_v30 = vld [vmem:[%s1865_s15 + $0xf8] sm:$0xff]   ;;  %v355_v35 = vld [vmem:[%s1858_s30] sm:$0xff]  ;;  %v360_v36 = vpack.c.bf16 %v356_v33, %v356_v33 }
  0xa2   : > { %v1374_v27 = vld [vmem:[%s1865_s15 + $0x30] sm:$0xff]   ;;  %v1378_v31 = vld [vmem:[%s1865_s15 + $0x38] sm:$0xff]   ;;  %v359_v38 = vpack.c.bf16 %v355_v35, %v355_v35  ;;  %v1380_v54 = vld [vmem:[#allocation8] sm:$0xff] (!%p1086_p13)  }
  0xa3   : > { %1108 = vmatpush3.bf16.msra.mxu0 %v1358_v11  ;;  %v1375_v28 = vld [vmem:[%s1865_s15 + $0xb0] sm:$0xff]   ;;  %v1379_v32 = vld [vmem:[%s1865_s15 + $0xb8] sm:$0xff]   ;;  %651 = vmatprep.mubr.bf16.mxu0 %v360_v36  ;;  %v1381_v56 = vld [vmem:[#allocation8 + $0x8] sm:$0xff] (!%p1086_p13)  }
  0xa4   : > { %1130 = vmatpush3.bf16.msra.mxu1 %v1359_v12  ;;  %1109 = vmatprep.subr.bf16.mxu0 %v1360_v13  ;;  %v358_v34 = vld [vmem:[%s1858_s30 + $0x18] sm:$0xff]  ;;  %v357_v39 = vld [vmem:[%s1858_s30 + $0x10] sm:$0xff]  ;;  %v1384_v59 = vld [vmem:[#allocation8 + $0x20] sm:$0xff] (!%p1086_p13)  }
  0xa5   : > { %1131 = vmatprep.subr.bf16.mxu1 %v1361_v14  ;;  %v362_v37 = vpack.c.bf16 %v358_v34, %v358_v34  ;;  %v361_v40 = vpack.c.bf16 %v357_v39, %v357_v39  ;;  %v354_v49 = vld [vmem:[#allocation2] sm:$0xff]  ;;  %v1382_v57 = vld [vmem:[#allocation8 + $0x10] sm:$0xff] (!%p1086_p13)   ;;  %v1385_v60 = vld [vmem:[#allocation8 + $0x28] sm:$0xff] (!%p1086_p13)  }
  0xa6   : > { %v1383_v58 = vld [vmem:[#allocation8 + $0x18] sm:$0xff] (!%p1086_p13)   ;;  %v1386_v0 = vld [vmem:[#allocation8 + $0x30] sm:$0xff] (!%p1086_p13)   ;;  %v832_v4 = vld [vmem:[#allocation9] sm:$0xff] (!%p1086_p13) }
  0xa7   : > { %1110 = vmatpush3.bf16.msra.mxu0 %v1362_v15  ;;  %691 = vmatprep.mubr.bf16.mxu1 %v362_v37  ;;  %v1087_v62 = vld [vmem:[%s1966_s2] ss:$0 sm:$0xff] (!%p1086_p13)  ;;  %v833_v5 = vld [vmem:[#allocation9 + $0x8] sm:$0xff] (!%p1086_p13)  ;;  %v834_v6 = vld [vmem:[#allocation9 + $0x10] sm:$0xff] (!%p1086_p13) }
  0xa8   : > { %1132 = vmatpush3.bf16.msra.mxu1 %v1363_v16  ;;  %1111 = vmatprep.subr.bf16.mxu0 %v1364_v17  ;;  %v1387_v2 = vld [vmem:[#allocation8 + $0x38] sm:$0xff] (!%p1086_p13)   ;;  %v1229_v8 = vpack.c.bf16 (!%p1086_p13), %v833_v5, %v832_v4  ;;  %v836_v11 = vld [vmem:[#allocation9 + $0x20] sm:$0xff] (!%p1086_p13)  ;;  %v837_v12 = vld [vmem:[#allocation9 + $0x28] sm:$0xff] (!%p1086_p13) }
  0xa9   : > { %1133 = vmatprep.subr.bf16.mxu1 %v1365_v18  ;;  %v835_v9 = vld [vmem:[#allocation9 + $0x18] sm:$0xff] (!%p1086_p13)  ;;  %v1235_v13 = vpack.c.bf16 (!%p1086_p13), %v837_v12, %v836_v11  ;;  %v838_v14 = vld [vmem:[#allocation9 + $0x30] sm:$0xff] (!%p1086_p13) }
  0xaa   : > { %v1232_v10 = vpack.c.bf16 (!%p1086_p13), %v835_v9, %v834_v6  ;;  %v839_v15 = vld [vmem:[#allocation9 + $0x38] sm:$0xff] (!%p1086_p13) }
  0xab   : > { %1112 = vmatpush3.bf16.msra.mxu0 %v1366_v19  ;;  %v1238_v16 = vpack.c.bf16 (!%p1086_p13), %v839_v15, %v838_v14  ;;  %v1088_v17 = vld [vmem:[%s1968_s4] ss:$0 sm:$0xff] (!%p1086_p13) }
  0xac   : > { %1134 = vmatpush3.bf16.msra.mxu1 %v1367_v20  ;;  %1113 = vmatprep.subr.bf16.mxu0 %v1368_v21  ;;  %v847_v33 = vld [vmem:[#allocation9 + $0x78] sm:$0xff] (!%p1086_p13) }
  0xad   : > { %1135 = vmatprep.subr.bf16.mxu1 %v1369_v22 }
  0xaf   : > { %1114 = vmatpush3.bf16.msra.mxu0 %v1370_v23  ;;  %v840_v23 = vld [vmem:[#allocation9 + $0x40] sm:$0xff] (!%p1086_p13) }
  0xb0   : > { %1136 = vmatpush3.bf16.msra.mxu1 %v1371_v24  ;;  %1115 = vmatprep.subr.bf16.mxu0 %v1372_v25  ;;  %v841_v24 = vld [vmem:[#allocation9 + $0x48] sm:$0xff] (!%p1086_p13) }
  0xb1   : > { %1137 = vmatprep.subr.bf16.mxu1 %v1373_v26  ;;  %v1241_v25 = vpack.c.bf16 (!%p1086_p13), %v841_v24, %v840_v23  ;;  %v842_v26 = vld [vmem:[#allocation9 + $0x50] sm:$0xff] (!%p1086_p13) }
  0xb3   : > { %1116 = vmatpush3.bf16.msra.mxu0 %v1374_v27  ;;  %v843_v27 = vld [vmem:[#allocation9 + $0x58] sm:$0xff] (!%p1086_p13) }
  0xb4   : > { %1138 = vmatpush3.bf16.msra.mxu1 %v1375_v28  ;;  %1117 = vmatprep.subr.bf16.mxu0 %v1376_v29  ;;  %v1244_v28 = vpack.c.bf16 (!%p1086_p13), %v843_v27, %v842_v26  ;;  %v844_v29 = vld [vmem:[#allocation9 + $0x60] sm:$0xff] (!%p1086_p13) }
  0xb5   : > { %1139 = vmatprep.subr.bf16.mxu1 %v1377_v30  ;;  %v845_v30 = vld [vmem:[#allocation9 + $0x68] sm:$0xff] (!%p1086_p13) }
  0xb7   : > { %1118 = vmatpush3.bf16.msra.mxu0 %v1378_v31  ;;  %v1247_v31 = vpack.c.bf16 (!%p1086_p13), %v845_v30, %v844_v29 }
  0xb8   : > { %1140 = vmatpush3.bf16.msra.mxu1 %v1379_v32  ;;  %1173 = vmatprep.subr.bf16.mxu0 (!%p1086_p13), %v1611_v55  ;;  %v846_v32 = vld [vmem:[#allocation9 + $0x70] sm:$0xff] (!%p1086_p13) }
  0xb9   : > { %1228 = vmatprep.subr.bf16.mxu1 (!%p1086_p13), %v1613_v7  ;;  %v1250_v34 = vpack.c.bf16 (!%p1086_p13), %v847_v33, %v846_v32 }
  0xba   : > { %652 = vmatmul.mubr.bf16.vlgmr.msra.gmra.mrb[0].mxu0 %v359_v38 }
  0xbb   : > { %692 = vmatmul.mubr.bf16.vlgmr.msra.gmra.mrb[0].mxu1 %v361_v40  ;;  %1174 = vmatpush3.bf16.msra.mxu0 (!%p1086_p13), %v1380_v54 }
  0xbc   : > { %1189 = vmatprep.mubr.msk.bf16.mxu0 (!%p1086_p13), %vm1612_vm0, %v1611_v55  ;;  %1175 = vmatprep.subr.bf16.mxu0 (!%p1086_p13), %v1611_v55 }
  0xbd   : > { %1225 = vmatprep.mubr.msk.f32.mxu1 (!%p1086_p13), %vm1612_vm0, %v1611_v55  ;;  %1230 = vmatpush3.bf16.msra.mxu1 (!%p1086_p13), %v1229_v8 }
  0xbe   : > { %1231 = vmatprep.subr.bf16.mxu1 (!%p1086_p13), %v1613_v7 }
  0xbf   : > { %1176 = vmatpush3.bf16.msra.mxu0 (!%p1086_p13), %v1381_v56 }
  0xc0   : > { %1177 = vmatprep.subr.bf16.mxu0 (!%p1086_p13), %v1611_v55 }
  0xc1   : > { %1233 = vmatpush3.bf16.msra.mxu1 (!%p1086_p13), %v1232_v10 }
  0xc2   : > { %1234 = vmatprep.subr.bf16.mxu1 (!%p1086_p13), %v1613_v7 }
  0xc3   : > { %1178 = vmatpush3.bf16.msra.mxu0 (!%p1086_p13), %v1382_v57 }
  0xc4   : > { %1179 = vmatprep.subr.bf16.mxu0 (!%p1086_p13), %v1611_v55 }
  0xc5   : > { %1236 = vmatpush3.bf16.msra.mxu1 (!%p1086_p13), %v1235_v13 }
  0xc6   : > { %1237 = vmatprep.subr.bf16.mxu1 (!%p1086_p13), %v1613_v7 }
  0xc7   : > { %1180 = vmatpush3.bf16.msra.mxu0 (!%p1086_p13), %v1383_v58 }
  0xc8   : > { %1181 = vmatprep.subr.bf16.mxu0 (!%p1086_p13), %v1611_v55 }
  0xc9   : > { %1239 = vmatpush3.bf16.msra.mxu1 (!%p1086_p13), %v1238_v16 }
  0xca   : > { %1240 = vmatprep.subr.bf16.mxu1 (!%p1086_p13), %v1613_v7 }
  0xcb   : > { %1182 = vmatpush3.bf16.msra.mxu0 (!%p1086_p13), %v1384_v59 }
  0xcc   : > { %1183 = vmatprep.subr.bf16.mxu0 (!%p1086_p13), %v1611_v55 }
  0xcd   : > { %1242 = vmatpush3.bf16.msra.mxu1 (!%p1086_p13), %v1241_v25 }
  0xce   : > { %1243 = vmatprep.subr.bf16.mxu1 (!%p1086_p13), %v1613_v7 }
  0xcf   : > { %1184 = vmatpush3.bf16.msra.mxu0 (!%p1086_p13), %v1385_v60 }
  0xd0   : > { %1185 = vmatprep.subr.bf16.mxu0 (!%p1086_p13), %v1611_v55 }
  0xd1   : > { %1245 = vmatpush3.bf16.msra.mxu1 (!%p1086_p13), %v1244_v28 }
  0xd2   : > { %1246 = vmatprep.subr.bf16.mxu1 (!%p1086_p13), %v1613_v7 }
  0xd3   : > { %1186 = vmatpush3.bf16.msra.mxu0 (!%p1086_p13), %v1386_v0 }
  0xd4   : > { %1187 = vmatprep.subr.bf16.mxu0 (!%p1086_p13), %v1611_v55 }
  0xd5   : > { %1248 = vmatpush3.bf16.msra.mxu1 (!%p1086_p13), %v1247_v31 }
  0xd6   : > { %1249 = vmatprep.subr.bf16.mxu1 (!%p1086_p13), %v1613_v7 }
  0xd7   : > { %1188 = vmatpush3.bf16.msra.mxu0 (!%p1086_p13), %v1387_v2 }
  0xd9   : > { %1251 = vmatpush3.bf16.msra.mxu1 (!%p1086_p13), %v1250_v34 }
 0x18d   : > { %v1119_v41 = vpop.f32.mrb[0].mxu0 }
 0x18e   : > { %v1141_v42 = vpop.f32.mrb[0].mxu1  ;;  %v1120_v43 = vpop.f32.mrb[1].mxu0 }
 0x18f   : > { %v1142_v44 = vpop.f32.mrb[1].mxu1  ;;  %v1121_v45 = vadd.f32 %v1120_v43, %v1119_v41  ;;  %v1122_v47 = vpop.f32.mrb[2].mxu0 }
 0x190   : > { %v1143_v46 = vadd.f32 %v1142_v44, %v1141_v42  ;;  %v1144_v48 = vpop.f32.mrb[2].mxu1  ;;  %v1123_v50 = vpop.f32.mrb[3].mxu0  ;;  %704 = sbr.rel (%p1086_p13) target bundleno = 1019 (0x3fb), region = 68 }
 0x191   : > { %v1145_v51 = vpop.f32.mrb[3].mxu1 }
 0x192   : > { %v694_v52 = vadd.f32 %v1143_v46, %v1121_v45 }
 0x194   : > { %v699_v53 = vadd.f32 %v694_v52, %v354_v49 }
 0x196   : > { %700 = vst [vmem:[#allocation2] sm:$0xff] %v699_v53 }
 0x19d   : > { %v705_v61 = vld [vmem:[#allocation2] sm:$0xff] }
 0x19e   : > { %v713_v63 = vadd.f32 %v1087_v62, %v705_v61 }
 0x1a0   : > { %v714_v1 = vmax.f32 %v713_v63, 0.0 }
 0x1a2   : > { %v715_v3 = vpack.c.bf16 %v714_v1, %v714_v1 }
 0x1a4   : > { %1190 = vmatmul.mubr.bf16.vlgmr.msra.gmra.mrb[0].mxu0 %v715_v3 }
 0x277   : > { %v821_v18 = vpop.f32.mrb[0].mxu0 }
 0x278   : > { %v822_v19 = vadd.f32 %v1088_v17, %v821_v18  ;;  %v1191_v20 = vpop.f32.mrb[1].mxu0 }
 0x279   : > { %v824_v21 = vpop.f32.mrb[2].mxu0 }
 0x27a   : > { %v1192_v22 = vpop.f32.mrb[3].mxu0  ;;  %827 = vmax.xlane.f32.xlu0 %v822_v19 }
 0x307   : > { %v828_v35 = vpop.xlane.xlu0 %827 }
 0x308   : > { %v829_v36 = vsub.f32 %v822_v19, %v828_v35 }
 0x30a   : > { %v830_v37 = vmul.f32 1.442695, %v829_v36 }
 0x30c   : > { %1388 = vpow2.f32 %v830_v37 }
 0x316   : > { %v1389_v38 = vpop.eup %1388 }
 0x317   : > { %1226 = vmatmul.mubr.f32.vlgmr.msra.gmra.mrb[0].mxu1 %v1389_v38 }
 0x3ea   : > { %v914_v39 = vpop.f32.mrb[0].mxu1 }
 0x3eb   : > { %v918_v40 = vmax.f32 %v914_v39, 1e-30  ;;  %v1227_v41 = vpop.f32.mrb[1].mxu1 }
 0x3ed   : > { %1390 = vrcp.f32 %v918_v40 }
 0x3f7   : > { %v1391_v42 = vpop.eup %1390 }
 0x3f8   : > { %v920_v43 = vmul.f32 %v1391_v42, %v1389_v38 }
 0x3fa   : > { %921 = vst [vmem:[#allocation11] sm:$0xff] %v920_v43 }
 0x3fb PF: > { %p1287_p2 = scmp.eq.s32.totalorder %s1679_s27, 1  ;;  %s1614_s11 = smov [#allocation11]  }
 0x3fc   : > { %s931_s13 = sshll.u32 %s1614_s11, 4  ;;  %s932_s13 = int_to_ptr.vmem [resolvable:$true] %s931_s13 }
 0x3fd   : > { %s1508_s17 = scalar_lea.vmem %s932_s13, 128  ;;  %p1515_p1 = scmp.lt.s32.totalorder %s932_s13, %s932_s13 }
 0x3fe   : > { %p1509_p3 = scmp.ne.s32.totalorder %s932_s13, %s1508_s17  ;;  %p1516_p4 = scmp.lt.s32.totalorder %s1508_s17, %s1508_s17 }
 0x400   : > { %p1510_p0 = pnand %p1509_p3, %p1287_p2  ;;  %p1517_p12 = por %p1516_p4, %p1515_p1 }
 0x402   : > { %p1511_p6 = pneg %p1510_p0 }
 0x404   : > { %p1518_p9 = pnand %p1517_p12, %p1511_p6 }
 0x406   : > { %1521 = shalt.err (!%p1518_p9)
}
 0x407   : > { %s1522_s10 = scalar_lea.hbm %s1970_s6, 128 }
 0x408   : > { %p1523_p7 = scmp.ne.s32.totalorder %s1970_s6, %s1522_s10  ;;  %p1528_p10 = scmp.lt.u32.totalorder %s1522_s10, %s1970_s6 }
 0x40a   : > { %p1524_p5 = pnand %p1523_p7, %p1287_p2 }
 0x40c   : > { %p1525_p8 = pneg %p1524_p5 }
 0x40e   : > { %p1530_p11 = pnand %p1528_p10, %p1525_p8 }
 0x410   : > { %1533 = shalt.err (!%p1530_p11)
}
 0x411   : > { %1265 = dma.vmem_to_hbm [thread:$0]  (%p1287_p2), %s932_s13, 128, %s1970_s6, [#allocation5]  }
 0x412   : > { %1575 = dma.done.wait (%p1287_p2), [#allocation5], 128  }
 0x413   : > { %1577 = vsyncadd (%p1287_p2), [#allocation5], 4294967168 }
 0x414 PF: > { %s24_s26 = sadd.s32 1, %s1600_s26   ;;  %s1990_s21 = smov %s1584_s22 }
 0x415   : > { %p21_p13 = scmp.ge.s32.totalorder %s24_s26, 4   ;;  %s1991_s22 = smov %s1588_s23 }
 0x416   : > { %s1992_s23 = smov %s1771_s14  ;;  %s1993_s24 = smov %s1596_s25 }
 0x417   : > { %s1994_s25 = smov %s1996_s9  ;;  %23 = sbr.rel (!%p21_p13) target bundleno = 10 (0xa), region = 111 }
 0x41e   :  { %944 = vsyncpa [#allocation4], 1 }
 0x41f   :  { %946 = vsyncpa [#allocation4 + $0x1], 1 }
 0x420   :  { %947 = vsyncpa [#allocation7], 1 }
 0x421   :  { %949 = vsyncpa [#allocation7 + $0x1], 1 }
 0x422   :  { %950 = vsyncpa [#allocation10], 1 }
 0x423   :  { %951 = vsyncpa [#allocation5], 1 }
 0x424   :  { %953 = vsyncpa [#allocation5 + $0x1], 1 }

</bundles_post_ra>
